<compile_context>
chip_gen: v6e
topology: v6e:2x2x1
jax: 0.10.0
libtpu: 0.0.40
codegen_flags: <defaults>
</compile_context>

<pallas_src>
import jax
import jax.numpy as jnp
from jax.experimental import pallas as pl
from jax.experimental.pallas import tpu as pltpu

MARGIN = 1.0
EPS = 1e-8  # matches torch.nn.functional.cosine_similarity default eps

_NUM_CORES = 2                 # megacore split on v7x; harmless (sequential) on v5e/v6e
_TILE_BUDGET_BYTES = 4 << 20   # per input buffer (x2 for double buffering)
_MAX_TILE_ROWS = 1024


def _make_kernel(B, D, tile_rows, tiles_per_core):
    def kernel(x_ref, out_ref):
        c = pl.program_id(0)   # parallel (core) axis
        t = pl.program_id(1)   # arbitrary (reduction over batch tiles) axis

        # Zero this core's resident partial-sum block at the start of its t-loop.
        @pl.when(t == 0)
        def _():
            out_ref[...] = jnp.zeros_like(out_ref)

        x = x_ref[...].astype(jnp.float32)          # (tile_rows, 3*D)
        a = x[:, 0:D]
        p = x[:, D:2 * D]
        n = x[:, 2 * D:3 * D]

        # Per-row dot products / squared norms (lane reductions).
        ap = jnp.sum(a * p, axis=-1, keepdims=True)
        an = jnp.sum(a * n, axis=-1, keepdims=True)
        aa = jnp.sum(a * a, axis=-1, keepdims=True)
        pp = jnp.sum(p * p, axis=-1, keepdims=True)
        nn = jnp.sum(n * n, axis=-1, keepdims=True)

        # max(sqrt(x), eps) == sqrt(max(x, eps^2))  (eps > 0), so rsqrt is exact.
        inv_a = jax.lax.rsqrt(jnp.maximum(aa, EPS * EPS))
        inv_p = jax.lax.rsqrt(jnp.maximum(pp, EPS * EPS))
        inv_n = jax.lax.rsqrt(jnp.maximum(nn, EPS * EPS))

        cos_ap = ap * inv_a * inv_p
        cos_an = an * inv_a * inv_n

        # loss_i = max(d(a,p) - d(a,n) + m, 0) = max(cos_an - cos_ap + m, 0)
        per_row = jnp.maximum(cos_an - cos_ap + MARGIN, 0.0)   # (tile_rows, 1)

        # Mask rows past the end of the batch (tail tiles / clamped tiles).
        row0 = (c * tiles_per_core + t) * tile_rows
        row_ids = jax.lax.broadcasted_iota(jnp.int32, (tile_rows, 1), 0) + row0
        per_row = jnp.where(row_ids < B, per_row, 0.0)

        # Accumulate this tile's partial SUM into the core's output block.
        out_ref[...] += jnp.sum(per_row)

    return kernel


def triplet_loss(features, target=None, *, max_tile_rows=_MAX_TILE_ROWS):
    """features: [B, 3, D] (anchor / positive / negative along dim 1).

    `target` is accepted and ignored, matching the torch module's forward().
    """
    del target
    B, three, D = features.shape
    assert three == 3, "features must have shape [B, 3, D]"

    # Metadata-only reshape of the contiguous [B, 3, D] array -> one packed input,
    # one contiguous DMA per tile instead of three strided-slice copies in HBM.
    x = features.reshape(B, 3 * D)
    itemsize = features.dtype.itemsize
    row_bytes = 3 * D * itemsize

    # Tile rows: biggest tile under the VMEM budget, multiple of 8 (or == B).
    tb = int(min(max_tile_rows, max(8, _TILE_BUDGET_BYTES // row_bytes)))
    tb -= tb % 8
    tb = max(tb, 8)
    if B <= tb:
        tb = B  # whole-array block (block shape == full dims is always legal)

    num_tiles = pl.cdiv(B, tb)
    nc = _NUM_CORES
    tpc = pl.cdiv(num_tiles, nc)

    def x_index_map(c, t):
        blk = c * tpc + t
        # Clamp so the DMA never targets a fully out-of-range block; rows of
        # clamped tiles are masked to zero inside the kernel.
        return (jnp.minimum(blk, num_tiles - 1), 0)

    out = pl.pallas_call(
        _make_kernel(B, D, tb, tpc),
        out_shape=jax.ShapeDtypeStruct((nc * 8, 128), jnp.float32),
        grid=(nc, tpc),
        in_specs=[pl.BlockSpec((tb, 3 * D), x_index_map)],
        out_specs=pl.BlockSpec((8, 128), lambda c, t: (c, 0)),
        compiler_params=pltpu.CompilerParams(
            dimension_semantics=("parallel", "arbitrary")),
        cost_estimate=pl.CostEstimate(
            flops=10 * B * D,
            transcendentals=3 * B,
            bytes_accessed=B * 3 * D * itemsize + nc * 8 * 128 * 4),
    )(x)

    # Each core's partial sum lives at element [0, 0] of its (8, 128) block.
    partials = out.reshape(nc, 8, 128)[:, 0, 0]
    return jnp.sum(partials) / B


def _reference(features):
    a = features[:, 0, :].astype(jnp.float32)
    p = features[:, 1, :].astype(jnp.float32)
    n = features[:, 2, :].astype(jnp.float32)

    def cos(x, y):
        nx = jnp.maximum(jnp.linalg.norm(x, axis=-1), EPS)
        ny = jnp.maximum(jnp.linalg.norm(y, axis=-1), EPS)
        return jnp.sum(x * y, axis=-1) / (nx * ny)

    d_ap = 1.0 - cos(a, p)
    d_an = 1.0 - cos(a, n)
    return jnp.mean(jnp.maximum(d_ap - d_an + MARGIN, 0.0))


if __name__ == "__main__":
    key = jax.random.PRNGKey(0)

    # Small, tile-friendly shapes: batch=8 triplets, hidden=128.
    B, D = 8, 128
    features = jax.random.normal(key, (B, 3, D), dtype=jnp.float32)
    loss = triplet_loss(features, target=None)
    jax.block_until_ready(loss)
    ref = _reference(features)
    assert jnp.allclose(loss, ref, atol=1e-4, rtol=1e-4), (loss, ref)

    # Exercise the multi-tile + tail-masking + clamped-tile path (B % tile != 0).
    key2, = jax.random.split(key, 1)
    B2, D2 = 20, 128
    features2 = jax.random.normal(key2, (B2, 3, D2), dtype=jnp.float32)
    loss2 = triplet_loss(features2, target=None, max_tile_rows=8)
    jax.block_until_ready(loss2)
    ref2 = _reference(features2)
    assert jnp.allclose(loss2, ref2, atol=1e-4, rtol=1e-4), (loss2, ref2)

    print("KERNEL_OK")
</pallas_src>

<mosaic_0001>
module attributes {stable_mosaic.version = 11 : i64} {
  func.func @kernel(%arg0: i32, %arg1: i32, %arg2: memref<8x384xf32, #tpu.memory_space<vmem>>, %arg3: memref<8x128xf32, #tpu.memory_space<vmem>>) attributes {dimension_semantics = [#tpu.dimension_semantics<parallel>, #tpu.dimension_semantics<arbitrary>], iteration_bounds = array<i64: 2, 1>, scalar_prefetch = 0 : i64, scratch_operands = 0 : i64, tpu.core_type = #tpu.core_type<tc>, window_params = [{transform_indices = @transform_0, window_bounds = array<i64: 8, 384>}, {transform_indices = @transform_1, window_bounds = array<i64: 8, 128>}]} {
    %c0_i32 = arith.constant 0 : i32
    %0 = arith.cmpi eq, %arg1, %c0_i32 : i32
    %1 = arith.extui %0 : i1 to i32
    %c0_i32_0 = arith.constant 0 : i32
    %2 = arith.cmpi ne, %1, %c0_i32_0 : i32
    scf.if %2 {
      %cst_18 = arith.constant 0.000000e+00 : f32
      %58 = vector.broadcast %cst_18 : f32 to vector<8x128xf32>
      %c0_19 = arith.constant 0 : index
      %c0_20 = arith.constant 0 : index
      %59 = vector.load %arg3[%c0_19, %c0_20] : memref<8x128xf32, #tpu.memory_space<vmem>>, vector<8x128xf32>
      tpu.vector_store %arg3[%c0_19, %c0_20], %58 {strides = array<i32>} : memref<8x128xf32, #tpu.memory_space<vmem>>, vector<8x128xf32>,
    } else {
    }
    %c0 = arith.constant 0 : index
    %c0_1 = arith.constant 0 : index
    %3 = vector.load %arg2[%c0, %c0_1] : memref<8x384xf32, #tpu.memory_space<vmem>>, vector<8x384xf32>
    %4 = vector.extract_strided_slice %3 {offsets = [0, 0], sizes = [8, 128], strides = [1, 1]} : vector<8x384xf32> to vector<8x128xf32>
    %5 = vector.extract_strided_slice %3 {offsets = [0, 128], sizes = [8, 128], strides = [1, 1]} : vector<8x384xf32> to vector<8x128xf32>
    %6 = vector.extract_strided_slice %3 {offsets = [0, 256], sizes = [8, 128], strides = [1, 1]} : vector<8x384xf32> to vector<8x128xf32>
    %7 = arith.mulf %4, %5 : vector<8x128xf32>
    %cst = arith.constant dense<0.000000e+00> : vector<8xf32>
    %8 = vector.multi_reduction <add>, %7, %cst [1] : vector<8x128xf32> to vector<8xf32>
    %9 = vector.shape_cast %8 : vector<8xf32> to vector<8x1xf32>
    %10 = arith.mulf %4, %6 : vector<8x128xf32>
    %cst_2 = arith.constant dense<0.000000e+00> : vector<8xf32>
    %11 = vector.multi_reduction <add>, %10, %cst_2 [1] : vector<8x128xf32> to vector<8xf32>
    %12 = vector.shape_cast %11 : vector<8xf32> to vector<8x1xf32>
    %13 = arith.mulf %4, %4 : vector<8x128xf32>
    %cst_3 = arith.constant dense<0.000000e+00> : vector<8xf32>
    %14 = vector.multi_reduction <add>, %13, %cst_3 [1] : vector<8x128xf32> to vector<8xf32>
    %15 = vector.shape_cast %14 : vector<8xf32> to vector<8x1xf32>
    %16 = arith.mulf %5, %5 : vector<8x128xf32>
    %cst_4 = arith.constant dense<0.000000e+00> : vector<8xf32>
    %17 = vector.multi_reduction <add>, %16, %cst_4 [1] : vector<8x128xf32> to vector<8xf32>
    %18 = vector.shape_cast %17 : vector<8xf32> to vector<8x1xf32>
    %19 = arith.mulf %6, %6 : vector<8x128xf32>
    %cst_5 = arith.constant dense<0.000000e+00> : vector<8xf32>
    %20 = vector.multi_reduction <add>, %19, %cst_5 [1] : vector<8x128xf32> to vector<8xf32>
    %21 = vector.shape_cast %20 : vector<8xf32> to vector<8x1xf32>
    %cst_6 = arith.constant 1.000000e-16 : f32
    %22 = vector.broadcast %cst_6 : f32 to vector<8x1xf32>
    %23 = arith.maximumf %15, %22 : vector<8x1xf32>
    %24 = math.rsqrt %23 : vector<8x1xf32>
    %cst_7 = arith.constant 1.000000e-16 : f32
    %25 = vector.broadcast %cst_7 : f32 to vector<8x1xf32>
    %26 = arith.maximumf %18, %25 : vector<8x1xf32>
    %27 = math.rsqrt %26 : vector<8x1xf32>
    %cst_8 = arith.constant 1.000000e-16 : f32
    %28 = vector.broadcast %cst_8 : f32 to vector<8x1xf32>
    %29 = arith.maximumf %21, %28 : vector<8x1xf32>
    %30 = math.rsqrt %29 : vector<8x1xf32>
    %31 = arith.mulf %9, %24 : vector<8x1xf32>
    %32 = arith.mulf %31, %27 : vector<8x1xf32>
    %33 = arith.mulf %12, %24 : vector<8x1xf32>
    %34 = arith.mulf %33, %30 : vector<8x1xf32>
    %35 = arith.subf %34, %32 : vector<8x1xf32>
    %cst_9 = arith.constant 1.000000e+00 : f32
    %36 = vector.broadcast %cst_9 : f32 to vector<8x1xf32>
    %37 = arith.addf %35, %36 : vector<8x1xf32>
    %cst_10 = arith.constant 0.000000e+00 : f32
    %38 = vector.broadcast %cst_10 : f32 to vector<8x1xf32>
    %39 = arith.maximumf %37, %38 : vector<8x1xf32>
    %c1_i32 = arith.constant 1 : i32
    %40 = arith.muli %arg0, %c1_i32 : i32
    %41 = arith.addi %40, %arg1 : i32
    %c8_i32 = arith.constant 8 : i32
    %42 = arith.muli %41, %c8_i32 : i32
    %43 = tpu.iota {dimensions = array<i32: 0>} : vector<8x1xi32>
    %44 = vector.broadcast %42 : i32 to vector<8x1xi32>
    %45 = arith.addi %43, %44 : vector<8x1xi32>
    %c8_i32_11 = arith.constant 8 : i32
    %46 = vector.broadcast %c8_i32_11 : i32 to vector<8x1xi32>
    %47 = arith.cmpi slt, %45, %46 : vector<8x1xi32>
    %cst_12 = arith.constant 0.000000e+00 : f32
    %48 = vector.broadcast %cst_12 : f32 to vector<8x1xf32>
    %49 = arith.select %47, %39, %48 : vector<8x1xi1>, vector<8x1xf32>
    %c0_13 = arith.constant 0 : index
    %c0_14 = arith.constant 0 : index
    %50 = vector.load %arg3[%c0_13, %c0_14] : memref<8x128xf32, #tpu.memory_space<vmem>>, vector<8x128xf32>
    %51 = vector.shape_cast %49 : vector<8x1xf32> to vector<1x8x1xf32>
    %cst_15 = arith.constant dense<0.000000e+00> : vector<1xf32>
    %52 = vector.multi_reduction <add>, %51, %cst_15 [1, 2] : vector<1x8x1xf32> to vector<1xf32>
    %53 = vector.shape_cast %52 : vector<1xf32> to vector<1x1x1xf32>
    %54 = vector.extract %53[0, 0, 0] : f32 from vector<1x1x1xf32>
    %55 = vector.broadcast %54 : f32 to vector<8x128xf32>
    %56 = arith.addf %50, %55 : vector<8x128xf32>
    %c0_16 = arith.constant 0 : index
    %c0_17 = arith.constant 0 : index
    %57 = vector.load %arg3[%c0_16, %c0_17] : memref<8x128xf32, #tpu.memory_space<vmem>>, vector<8x128xf32>
    tpu.vector_store %arg3[%c0_16, %c0_17], %56 {strides = array<i32>} : memref<8x128xf32, #tpu.memory_space<vmem>>, vector<8x128xf32>,
    return
  }
  func.func @transform_0(%arg0: i32, %arg1: i32) -> (i32, i32) {
    %c1_i32 = arith.constant 1 : i32
    %0 = arith.muli %arg0, %c1_i32 : i32
    %1 = arith.addi %0, %arg1 : i32
    %c0_i32 = arith.constant 0 : i32
    %2 = arith.minsi %1, %c0_i32 : i32
    %c0_i32_0 = arith.constant 0 : i32
    %c0_i32_1 = arith.constant 0 : i32
    return %2, %c0_i32_0 : i32, i32
  }
  func.func @transform_1(%arg0: i32, %arg1: i32) -> (i32, i32) {
    %c0_i32 = arith.constant 0 : i32
    %c0_i32_0 = arith.constant 0 : i32
    return %arg0, %c0_i32 : i32, i32
  }
}

</mosaic_0001>

<bundles_post_ra>
// kernel: tpu_custom_call.1
= control target key start
LH: loop header
LB: loop body
LE: loop exit
PB: predicated region body
PF: predicated region fallthrough
CT: control target
= control target key end

     0   :  { %6 = vsyncpa [#allocation3], 0  ;;  %s711_s0 = inlined_call_operand.hbm [shape: f32[8,384], index: 0, kind: input, shape index: {}]   ;;  %s712_s1 = inlined_call_operand.hbm [shape: f32[16,128], index: 1, kind: output, shape index: {}]  }
   0x1   :  { %8 = vsyncpa [#allocation3 + $0x1], 0 }
   0x2   :  { %9 = vsyncpa [#allocation4], 0 }
   0x3   :  { %11 = vsyncpa [#allocation4 + $0x1], 0  ;;  %s561_s6 = smov 0   ;;  %s563_s7 = smov 0  }
   0x4   :  { %s565_s8 = smov 0   ;;  %s567_s9 = smov 0  }
   0x5   :  { %s569_s10 = smov 0   ;;  %s571_s11 = smov 0  }
   0x6   :  { %s573_s12 = smov 0   ;;  %s575_s13 = smov 0  }
   0x7 LB: > { %s308_s14 = sadd.s32 4294967295, %s547_s13   ;;  %s309_s15 = sadd.s32 4294967294, %s547_s13   ;;  %s547_s13 = sphi %s575_s13, %s17_s13   ;;  %s543_s12 = sphi %s573_s12, %s731_s12   ;;  %s539_s11 = sphi %s571_s11, %s730_s11   ;;  %s535_s10 = sphi %s569_s10, %s701_s10   ;;  %s531_s9 = sphi %s567_s9, %s729_s9   ;;  %s527_s8 = sphi %s565_s8, %s728_s8   ;;  %s523_s7 = sphi %s563_s7, %s727_s7   ;;  %s519_s6 = sphi %s561_s6, %s726_s6  }
   0x8   : > { %s29_s16 = sadd.s32 1, %s543_s12  ;;  %p516_p1 = scmp.ne.s32.totalorder %s535_s10, 0 }
   0x9   : > { %p31_p0 = scmp.ge.s32.totalorder %s29_s16, 2  ;;  %p50_p2 = scmp.eq.s32.totalorder %s547_s13, 0 }
   0xa   : > { %p55_p3 = scmp.ne.s32.totalorder %s535_s10, %s531_s9  ;;  %p56_p5 = scmp.eq.s32.totalorder %s308_s14, 0 }
   0xb   : > { %s733_s16 = smov (%p31_p0, %s29_s16), 0  ;;  %p607_p4 = por %p516_p1, %p50_p2 }
   0xc   : > { %p611_p6 = por %p56_p5, %p55_p3  ;;  %s65_s19 = ssub.s32 %s543_s12, %s733_s16 }
   0xd   : > { %p66_p7 = scmp.eq.s32.totalorder %s65_s19, 0  ;;  %s68_s20 = sadd.s32 1, %s527_s8 }
   0xe   : > { %s716_s18 = scalar_select %p611_p6, 1, 0 }
   0xf   : > { %s619_s21 = scalar_select %p66_p7, %s527_s8, %s68_s20  }
  0x10   : > { %p78_p8 = scmp.ne.s32.totalorder %s527_s8, %s523_s7  ;;  %p79_p9 = scmp.eq.s32.totalorder %s308_s14, 1 }
  0x11   : > { %p84_p10 = scmp.ne.s32.totalorder %s523_s7, %s519_s6  ;;  %p85_p11 = scmp.eq.s32.totalorder %s309_s15, 1 }
  0x12   : > { %p625_p12 = por %p79_p9, %p78_p8  ;;  %p337_p1 = scmp.lt.s32.totalorder %s547_s13, 2 }
  0x13   : > { %p630_p0 = por %p85_p11, %p84_p10  ;;  %s549_s25 = smov [#allocation2]  }
  0x14   : > { %s717_s22 = scalar_select %p625_p12, 1, 0 }
  0x15   : > { %s718_s23 = scalar_select %p630_p0, 1, 0 }
  0x16   : > { %p637_p2 = pnand %p337_p1, %p607_p4  ;;  %s120_s26 = sshll.u32 %s549_s25, 4  ;;  %s121_s26 = int_to_ptr.vmem [resolvable:$true] %s120_s26 }
  0x17   : > { %s418_s29 = scalar_lea.hbm %s711_s0, 384 }
  0x18   : > { %p419_p7 = scmp.ne.s32.totalorder %s711_s0, %s418_s29  ;;  %p420_p8 = pneg %p637_p2 }
  0x19   : > { %p425_p10 = scmp.lt.s32.totalorder %s418_s29, %s418_s29 }
  0x1a   : > { %p421_p4 = pnand %p420_p8, %p419_p7 }
  0x1c   : > { %p422_p9 = pneg %p421_p4 }
  0x1e   : > { %p427_p11 = pnand %p425_p10, %p422_p9 }
  0x20   : > { %430 = shalt.err (!%p427_p11)
}
  0x21   : > { %s431_s3 = scalar_lea.vmem %s121_s26, 384  ;;  %s438_s4 = scalar_lea.vmem %s121_s26, 768 }
  0x22   : > { %p432_p1 = scmp.ne.s32.totalorder %s121_s26, %s431_s3  ;;  %p439_p5 = scmp.lt.s32.totalorder %s121_s26, %s121_s26 }
  0x23   : > { %p440_p0 = scmp.lt.s32.totalorder %s438_s4, %s431_s3 }
  0x24   : > { %p434_p13 = pnand %p432_p1, %p420_p8 }
  0x25   : > { %p441_p12 = por %p440_p0, %p439_p5 }
  0x26   : > { %p435_p3 = pneg %p434_p13 }
  0x28   : > { %p442_p6 = pnand %p441_p12, %p435_p3 }
  0x2a   : > { %445 = shalt.err (!%p442_p6)
}
  0x2b   : > { %332 = dma.hbm_to_vmem [thread:$0]  (!%p637_p2), %s711_s0, 384, %s121_s26, [#allocation3]  }
  0x2c   : > { %p720_p7 = scmp.lt.s32.totalorder %s547_s13, 3  ;;  %p721_p4 = scmp.ge.s32.totalorder %s547_s13, 1 }
  0x2e   : > { %p126_p9 = pnand %p721_p4, %p720_p7 }
  0x2f   : > { %s131_s14 = sand.u32 (!%p126_p9), 1, %s535_s10   ;;  %p722_p12 = scmp.ne.s32.totalorder (!%p126_p9), %s716_s18, 0 }
  0x30   : > { %129 = sbr.rel (%p126_p9) target bundleno = 439 (0x1b7), region = 24  ;;  %s132_s17 = scalar_lea.sflag (!%p126_p9), [#allocation3], %s131_s14 }
  0x31   : > { %s322_s15 = smul.u32 (!%p126_p9), 24, %s131_s14 }
  0x33   : > { %s135_s19 = scalar_lea.vmem (!%p126_p9), [#allocation2], %s322_s15 }
  0x35   : > { %509 = dma.done.wait (%p722_p12), %s132_s17, 384  }
  0x36   : > { %511 = vsyncadd (%p722_p12), %s132_s17, 4294966912  ;;  %v162_v0 = vld [vmem:[%s135_s19] sm:$0xff]  ;;  %v164_v1 = vld [vmem:[%s135_s19 + $0x10] sm:$0xff]  ;;  %v195_v15 = vlaneseq  ;;  %s315_s18 = sshll.u32 %s539_s11, 3  ;;  %vm202_vm1 = vcmask 7168   ;;  %s151_s20 = sand.u32 1, %s523_s7  }
  0x37   : > { %v163_v2 = vld [vmem:[%s135_s19 + $0x8] sm:$0xff]  ;;  %v171_v3 = vmul.f32 %v162_v0, %v162_v0  ;;  %v177_v4 = vmul.f32 %v164_v1, %v164_v1  ;;  %v168_v7 = vmul.f32 %v164_v1, %v162_v0  ;;  %v197_v22 = vstv %s315_s18  ;;  %s314_s24 = sshll.u32 %s151_s20, 3  ;;  %s317_s25 = sshll.u32 %s539_s11, 7 }
  0x38   : > { %v174_v5 = vmul.f32 %v163_v2, %v163_v2  ;;  %v165_v6 = vmul.f32 %v163_v2, %v162_v0  ;;  %v196_v20 = vshrl.u32 %v195_v15, 7  ;;  %s153_s26 = scalar_lea.vmem [#allocation5], %s314_s24  ;;  %s228_s2 = scalar_lea.hbm %s712_s1, %s317_s25 }
  0x39   : > { %172 = vadd.xlane.f32.xlu0 %v171_v3  ;;  %178 = vadd.xlane.f32.xlu1 %v177_v4  ;;  %s230_s27 = sshll.u32 %s153_s26, 4  ;;  %s217_s3 = scalar_lea.sflag [#allocation4], %s151_s20  ;;  %s231_s27 = int_to_ptr.vmem [resolvable:$true] %s230_s27 }
  0x3a   : > { %v198_v26 = vadd.s32 %v197_v22, %v196_v20  ;;  %s446_s4 = scalar_lea.vmem %s231_s27, 128  ;;  %p723_p13 = scmp.ne.s32.totalorder %s717_s22, 0 }
  0x3b   : > { %p447_p6 = scmp.ne.s32.totalorder %s231_s27, %s446_s4  ;;  %s550_s5 = smov [#allocation5]  }
  0x3c   : > { %vm199_vm0 = vcmp.lt.s32.totalorder %v198_v26, 8  ;;  %s450_s9 = sshll.u32 %s550_s5, 4  ;;  %s451_s9 = int_to_ptr.vmem [resolvable:$false] %s450_s9 }
  0x3d   : > { %175 = vadd.xlane.f32.xlu0 %v174_v5  ;;  %166 = vadd.xlane.f32.xlu1 %v165_v6  ;;  %p448_p0 = pnand %p447_p6, %p723_p13  ;;  %s452_s11 = scalar_lea.vmem %s451_s9, 256 }
  0x3e   : > { %p453_p3 = scmp.lt.s32.totalorder %s231_s27, %s451_s9  ;;  %p454_p5 = scmp.lt.s32.totalorder %s452_s11, %s446_s4 }
  0x3f   : > { %p449_p2 = pneg %p448_p0 }
  0x40   : > { %p455_p8 = por %p454_p5, %p453_p3 }
  0x41   : > { %169 = vadd.xlane.f32.xlu0 %v168_v7 }
  0x42   : > { %p456_p10 = pnand %p455_p8, %p449_p2 }
  0xc2   : > { %v173_v8 = vpop.xlane.xlu0 %172  ;;  %v179_v9 = vpop.xlane.xlu1 %178 }
  0xc3   : > { %v180_v10 = vmax.f32 %v173_v8, 1e-16  ;;  %v184_v11 = vmax.f32 %v179_v9, 1e-16 }
  0xc5   : > { %412 = vrsqrt.f32 %v180_v10 }
  0xc6   : > { %v176_v12 = vpop.xlane.xlu0 %175  ;;  %414 = vrsqrt.f32 %v184_v11  ;;  %v167_v17 = vpop.xlane.xlu1 %166 }
  0xc7   : > { %v182_v13 = vmax.f32 %v176_v12, 1e-16 }
  0xc9   : > { %416 = vrsqrt.f32 %v182_v13 }
  0xca   : > { %v170_v14 = vpop.xlane.xlu0 %169 }
  0xd2   : > { %v413_v16 = vpop.eup %412 }
  0xd3   : > { %v188_v18 = vmul.f32 %v413_v16, %v170_v14  ;;  %v415_v19 = vpop.eup %414  ;;  %v186_v21 = vmul.f32 %v413_v16, %v167_v17 }
  0xd5   : > { %v189_v24 = vmul.f32 %v415_v19, %v188_v18 }
  0xd6   : > { %v417_v23 = vpop.eup %416 }
  0xd7   : > { %v187_v25 = vmul.f32 %v417_v23, %v186_v21 }
  0xd9   : > { %v190_v27 = vsub.f32 %v189_v24, %v187_v25 }
  0xdb   : > { %v191_v28 = vadd.f32 1.0, %v190_v27 }
  0xdd   : > { %v192_v29 = vmax.f32 %v191_v28, 0.0 }
  0xdf   : > { %v200_v30 = vsel %vm199_vm0, %v192_v29, 0.0 }
  0xe0   : > { %v203_v31 = vsel %vm202_vm1, %v200_v30, 0.0 }
  0xe1   : > { %204 = vadd.xlane.f32.xlu1 %v203_v31 }
 0x16a   : > { %v205_v32 = vpop.xlane.xlu1 %204 }
 0x16b   : > { %v206_v33 = vrot.slane %v205_v32, 4 }
 0x16d   : > { %v207_v34 = vadd.f32 %v206_v33, %v205_v32 }
 0x16f   : > { %v208_v35 = vrot.slane %v207_v34, 2 }
 0x171   : > { %v209_v36 = vadd.f32 %v208_v35, %v207_v34 }
 0x173   : > { %v210_v37 = vrot.slane %v209_v36, 1 }
 0x175   : > { %v211_v38 = vadd.f32 %v210_v37, %v209_v36 }
 0x177   : > { %323 = vpush %v211_v38 }
 0x1a8   : > { %s324_s28 = spop %323 }
 0x1a9   : > { %v213_v39 = vstv %s324_s28 }
 0x1aa   : > { %215 = vst [vmem:[%s153_s26] sm:$0xff] %v213_v39 }
 0x1ab   : > { %459 = shalt.err (!%p456_p10)
}
 0x1ac   : > { %s460_s14 = scalar_lea.hbm %s228_s2, 128  ;;  %s464_s19 = scalar_lea.hbm %s712_s1, 256 }
 0x1ad   : > { %p461_p11 = scmp.ne.s32.totalorder %s228_s2, %s460_s14  ;;  %p465_p4 = scmp.lt.s32.totalorder %s228_s2, %s712_s1 }
 0x1ae   : > { %p466_p9 = scmp.lt.s32.totalorder %s464_s19, %s460_s14 }
 0x1af   : > { %p462_p1 = pnand %p461_p11, %p723_p13 }
 0x1b0   : > { %p467_p12 = por %p466_p9, %p465_p4 }
 0x1b1   : > { %p463_p7 = pneg %p462_p1 }
 0x1b3   : > { %p468_p6 = pnand %p467_p12, %p463_p7 }
 0x1b5   : > { %471 = shalt.err (!%p468_p6)
}
 0x1b6   : > { %327 = dma.vmem_to_hbm [thread:$0]  (%p723_p13), %s231_s27, 128, %s228_s2, %s217_s3  }
 0x1b7 PF: > { %s242_s24 = sand.u32 1, %s519_s6   ;;  %p724_p0 = scmp.ne.s32.totalorder %s718_s23, 0 }
 0x1b8   : > { %p725_p2 = scmp.ge.s32.totalorder %s547_s13, 2  ;;  %s243_s25 = scalar_lea.sflag [#allocation4], %s242_s24 }
 0x1ba   : > { %p334_p3 = pnand %p725_p2, %p724_p0 }
 0x1bc   : > { %p335_p5 = pneg %p334_p3 }
 0x1be   : > { %513 = dma.done.wait (%p335_p5), %s243_s25, 128  }
 0x1bf   : > { %515 = vsyncadd (%p335_p5), %s243_s25, 4294967168  ;;  %s17_s13 = sadd.s32 1, %s547_s13   ;;  %s726_s6 = smov %s523_s7 }
 0x1c0   : > { %p14_p8 = scmp.ge.s32.totalorder %s17_s13, 4   ;;  %s727_s7 = smov %s527_s8 }
 0x1c1   : > { %s728_s8 = smov %s619_s21  ;;  %s729_s9 = smov %s535_s10 }
 0x1c2   : > { %s701_s10 = smov 0   ;;  %s730_s11 = smov %s543_s12 }
 0x1c3   : > { %s731_s12 = smov %s733_s16  ;;  %16 = sbr.rel (!%p14_p8) target bundleno = 7 (0x7), region = 73 }
 0x1c8   :  { %248 = vsyncpa [#allocation3], 1 }
 0x1c9   :  { %250 = vsyncpa [#allocation3 + $0x1], 1 }
 0x1ca   :  { %251 = vsyncpa [#allocation4], 1 }
 0x1cb   :  { %253 = vsyncpa [#allocation4 + $0x1], 1 }

</bundles_post_ra>
